<compile_context>
chip_gen: v5e
topology: v5e:2x2
jax: 0.10.0
libtpu: 0.0.40
codegen_flags: <defaults>
</compile_context>

<pallas_src>
import jax
import jax.numpy as jnp
from jax import lax
from jax.experimental import pallas as pl
from jax.experimental.pallas import tpu as pltpu


def _round_up(x, m):
    return (x + m - 1) // m * m


def _make_kernel(activation):
    if activation == "relu":
        act = lambda v: jnp.maximum(v, 0.0)
    elif activation == "sigmoid":
        act = jax.nn.sigmoid
    elif activation == "tanh":
        act = jnp.tanh
    else:
        raise ValueError(f"unsupported activation: {activation}")

    def kernel(text_ref, starts_ref, ends_ref, emb_ref, w1_ref, b1_ref,
               w2_ref, b2_ref, out_ref, gathered_ref, dma_sems):
        n_p = gathered_ref.shape[0]      # padded token count (static)
        k_inflight = dma_sems.shape[0]   # DMA ring depth (static)
        b_p = starts_ref.shape[0]        # padded bag count (static)

        # ---------- manual ring-buffered row gather: HBM table -> VMEM ----------
        def issue(i):
            tid = text_ref[i]            # SMEM scalar read (scalar-prefetched ids)
            pltpu.make_async_copy(
                emb_ref.at[pl.ds(tid, 1), :],
                gathered_ref.at[pl.ds(i, 1), :],
                dma_sems.at[i % k_inflight],
            ).start()

        # prologue: put k_inflight row-DMAs in flight (static, tiny unroll)
        for j in range(min(k_inflight, n_p)):
            issue(j)

        @pl.loop(0, n_p)
        def _(i):
            # wait for row i, then refill the ring with row i + k_inflight
            pltpu.make_async_copy(
                emb_ref.at[pl.ds(0, 1), :],
                gathered_ref.at[pl.ds(i, 1), :],
                dma_sems.at[i % k_inflight],
            ).wait()

            @pl.when(i + k_inflight < n_p)
            def _():
                issue(i + k_inflight)

        # ---------- EmbeddingBag(mean) as a single [B,N] @ [N,D] matmul ----------
        starts = starts_ref[...]                                   # (b_p, 1) int32
        ends = ends_ref[...]                                       # (b_p, 1) int32
        tok_iota = lax.broadcasted_iota(jnp.int32, (b_p, n_p), 1)
        seg = jnp.logical_and(tok_iota >= starts,
                              tok_iota < ends).astype(jnp.bfloat16)   # exact 0/1
        counts = jnp.maximum((ends - starts).astype(jnp.float32), 1.0)
        bag_sum = jnp.dot(seg, gathered_ref[...].astype(jnp.bfloat16),
                          preferred_element_type=jnp.float32)      # (b_p, d_p)
        bag_mean = bag_sum / counts                                # exact f32 mean

        # ---------- Linear -> activation -> (dropout = identity) -> Linear ----------
        h = jnp.dot(bag_mean.astype(jnp.bfloat16), w1_ref[...],
                    preferred_element_type=jnp.float32) + b1_ref[...]
        h = act(h)
        out_ref[...] = jnp.dot(h.astype(jnp.bfloat16), w2_ref[...],
                               preferred_element_type=jnp.float32) + b2_ref[...]

    return kernel


def neural_network_forward(text, offsets, emb_table, hidden_w, hidden_b,
                           output_w, output_b, *, activation="relu",
                           max_inflight_dmas=8):
    """text: int32 [N]; offsets: int32 [B]; emb_table: [V, D];
    hidden_w: [H, D], hidden_b: [H]; output_w: [C, H], output_b: [C]
    (PyTorch layouts). Returns f32 [B, C]."""
    n = int(text.shape[0])
    bsz = int(offsets.shape[0])
    v, d = emb_table.shape
    h = hidden_w.shape[0]
    c = output_w.shape[0]

    # padded sizes: lane dims -> multiples of 128, sublane dims -> multiples of 8
    d_p = _round_up(d, 128)
    h_p = _round_up(h, 128)
    c_p = _round_up(c, 128)
    n_p = _round_up(max(n, 8), 8)
    b_p = _round_up(max(bsz, 1), 8)
    k_dma = max(1, int(max_inflight_dmas))

    # ---- host-side packing / zero padding (zeros are neutral everywhere) ----
    ends = jnp.concatenate([offsets[1:].astype(jnp.int32),
                            jnp.array([n], dtype=jnp.int32)])
    # OOB token ids are clamped (PyTorch EmbeddingBag would raise); pad ids -> row 0,
    # which is excluded from every bag by the segment mask.
    text_ids = jnp.clip(text.astype(jnp.int32), 0, v - 1)
    text_p = jnp.pad(text_ids, (0, n_p - n))
    starts_p = jnp.pad(offsets.astype(jnp.int32), (0, b_p - bsz),
                       constant_values=n).reshape(b_p, 1)
    ends_p = jnp.pad(ends, (0, b_p - bsz), constant_values=n).reshape(b_p, 1)

    # embedding table stays in HBM; only the feature dim is padded (no V copy/pad).
    emb_p = jnp.pad(emb_table.astype(jnp.float32), ((0, 0), (0, d_p - d)))
    w1_p = jnp.pad(hidden_w.astype(jnp.float32).T,
                   ((0, d_p - d), (0, h_p - h))).astype(jnp.bfloat16)
    b1_p = jnp.pad(hidden_b.astype(jnp.float32), (0, h_p - h)).reshape(1, h_p)
    w2_p = jnp.pad(output_w.astype(jnp.float32).T,
                   ((0, h_p - h), (0, c_p - c))).astype(jnp.bfloat16)
    b2_p = jnp.pad(output_b.astype(jnp.float32), (0, c_p - c)).reshape(1, c_p)

    # ---- VMEM budget: double-buffer every auto-pipelined block + transients ----
    est = (n_p * d_p * 4                          # gathered rows (f32 scratch)
           + 2 * (d_p * h_p + h_p * c_p) * 2      # bf16 weights (x2 buffers)
           + 2 * (h_p + c_p) * 4                  # biases (x2 buffers)
           + 2 * 2 * b_p * 4                      # starts / ends (x2 buffers)
           + 2 * b_p * c_p * 4                    # output block (x2 buffers)
           + b_p * n_p * 2                        # seg (bf16, transient)
           + n_p * d_p * 2                        # gathered bf16 cast (transient)
           + b_p * (d_p + h_p) * 4)               # bag_mean / h (transient)
    try:
        vmem_cap = int(pltpu.get_tpu_info().vmem_capacity_bytes)
    except Exception:
        vmem_cap = 64 * 1024 * 1024               # conservative (v7x) fallback
    vmem_limit = int(min(int(0.75 * vmem_cap),
                         max(16 * 1024 * 1024, 2 * est)))

    grid_spec = pltpu.PrefetchScalarGridSpec(
        num_scalar_prefetch=1,                    # token ids -> SMEM
        grid=(1,),
        in_specs=[
            pl.BlockSpec((b_p, 1), lambda i, t: (0, 0)),     # bag starts
            pl.BlockSpec((b_p, 1), lambda i, t: (0, 0)),     # bag ends
            pl.BlockSpec(memory_space=pl.ANY),               # embedding table (HBM)
            pl.BlockSpec((d_p, h_p), lambda i, t: (0, 0)),   # hidden weight
            pl.BlockSpec((1, h_p), lambda i, t: (0, 0)),     # hidden bias
            pl.BlockSpec((h_p, c_p), lambda i, t: (0, 0)),   # output weight
            pl.BlockSpec((1, c_p), lambda i, t: (0, 0)),     # output bias
        ],
        out_specs=pl.BlockSpec((b_p, c_p), lambda i, t: (0, 0)),
        scratch_shapes=[
            pltpu.VMEM((n_p, d_p), jnp.float32),             # gathered token rows
            pltpu.SemaphoreType.DMA((k_dma,)),               # DMA ring
        ],
    )

    out_p = pl.pallas_call(
        _make_kernel(activation),
        out_shape=jax.ShapeDtypeStruct((b_p, c_p), jnp.float32),
        grid_spec=grid_spec,
        compiler_params=pltpu.CompilerParams(
            dimension_semantics=("arbitrary",),
            vmem_limit_bytes=vmem_limit),
    )(text_p, starts_p, ends_p, emb_p, w1_p, b1_p, w2_p, b2_p)

    return out_p[:bsz, :c]


def _reference(text, offsets, emb_table, hidden_w, hidden_b, output_w, output_b,
               activation="relu"):
    """Pure-JAX f32 reference mirroring EmbeddingBag(mean) + Linear + act + Linear."""
    n = text.shape[0]
    ends = jnp.concatenate([offsets[1:], jnp.array([n], dtype=jnp.int32)])
    tok_emb = emb_table[text]
    idx = jnp.arange(n)[None, :]
    seg = ((idx >= offsets[:, None]) & (idx < ends[:, None])).astype(jnp.float32)
    counts = jnp.maximum(seg.sum(axis=1, keepdims=True), 1.0)
    bag_mean = (seg @ tok_emb) / counts
    h = bag_mean @ hidden_w.T + hidden_b
    act = {"relu": lambda v: jnp.maximum(v, 0.0),
           "sigmoid": jax.nn.sigmoid, "tanh": jnp.tanh}[activation]
    return act(h) @ output_w.T + output_b


if __name__ == "__main__":
    # small, module-consistent shapes
    vocab_size, embed_dim, hidden_size, output_size = 32, 16, 32, 4
    batch, total_tokens = 2, 8
    activation = "relu"

    key = jax.random.PRNGKey(0)
    k_emb, k_w1, k_b1, k_w2, k_b2, k_txt = jax.random.split(key, 6)

    emb_table = jax.random.normal(k_emb, (vocab_size, embed_dim), dtype=jnp.float32)
    hidden_w = 0.1 * jax.random.normal(k_w1, (hidden_size, embed_dim), dtype=jnp.float32)
    hidden_b = 0.1 * jax.random.normal(k_b1, (hidden_size,), dtype=jnp.float32)
    output_w = 0.1 * jax.random.normal(k_w2, (output_size, hidden_size), dtype=jnp.float32)
    output_b = 0.1 * jax.random.normal(k_b2, (output_size,), dtype=jnp.float32)

    text = jax.random.randint(k_txt, (total_tokens,), 0, vocab_size, dtype=jnp.int32)
    offsets = jnp.array([0, 5], dtype=jnp.int32)   # bag 0: tokens [0,5), bag 1: [5,8)

    out = neural_network_forward(text, offsets, emb_table, hidden_w, hidden_b,
                                 output_w, output_b, activation=activation)
    out = jax.block_until_ready(out)

    ref = _reference(text, offsets, emb_table, hidden_w, hidden_b,
                     output_w, output_b, activation)
    assert out.shape == (batch, output_size)
    # tolerance for bf16 MXU operands (f32 accumulation, exact mean division)
    assert jnp.allclose(out, ref, atol=2e-2, rtol=2e-2), (out, ref)
    print("KERNEL_OK")
</pallas_src>

<mosaic_0001>
module attributes {stable_mosaic.version = 11 : i64} {
  func.func @kernel(%arg0: i32, %arg1: memref<8xi32, #tpu.memory_space<smem>>, %arg2: memref<8x1xi32, #tpu.memory_space<vmem>>, %arg3: memref<8x1xi32, #tpu.memory_space<vmem>>, %arg4: memref<32x128xf32, #tpu.memory_space<any>>, %arg5: memref<128x128xbf16, #tpu.memory_space<vmem>>, %arg6: memref<1x128xf32, #tpu.memory_space<vmem>>, %arg7: memref<128x128xbf16, #tpu.memory_space<vmem>>, %arg8: memref<1x128xf32, #tpu.memory_space<vmem>>, %arg9: memref<8x128xf32, #tpu.memory_space<vmem>>, %arg10: memref<8x128xf32, #tpu.memory_space<vmem>>, %arg11: memref<8x!tpu.dma_semaphore, #tpu.memory_space<semaphore_mem>>) attributes {dimension_semantics = [#tpu.dimension_semantics<arbitrary>], iteration_bounds = array<i64: 1>, scalar_prefetch = 1 : i64, scratch_operands = 2 : i64, tpu.core_type = #tpu.core_type<tc>, window_params = [{pipeline_mode = #tpu.pipeline_mode<synchronous>, transform_indices = @transform_0, window_bounds = array<i64: 8, 1>}, {pipeline_mode = #tpu.pipeline_mode<synchronous>, transform_indices = @transform_1, window_bounds = array<i64: 8, 1>}, {}, {pipeline_mode = #tpu.pipeline_mode<synchronous>, transform_indices = @transform_3, window_bounds = array<i64: 128, 128>}, {pipeline_mode = #tpu.pipeline_mode<synchronous>, transform_indices = @transform_4, window_bounds = array<i64: 1, 128>}, {pipeline_mode = #tpu.pipeline_mode<synchronous>, transform_indices = @transform_5, window_bounds = array<i64: 128, 128>}, {pipeline_mode = #tpu.pipeline_mode<synchronous>, transform_indices = @transform_6, window_bounds = array<i64: 1, 128>}, {pipeline_mode = #tpu.pipeline_mode<synchronous>, transform_indices = @transform_7, window_bounds = array<i64: 8, 128>}]} {
    %c0 = arith.constant 0 : index
    %0 = memref.load %arg1[%c0] : memref<8xi32, #tpu.memory_space<smem>>
    %c0_i32 = arith.constant 0 : i32
    %c0_i32_0 = arith.constant 0 : i32
    %1 = tpu.memref_slice %arg4[%0, %c0_i32_0] : memref<32x128xf32, #tpu.memory_space<any>> -> memref<1x128xf32, #tpu.memory_space<any>>
    %c0_i32_1 = arith.constant 0 : i32
    %c0_i32_2 = arith.constant 0 : i32
    %2 = tpu.memref_slice %arg10[%c0_i32_1, %c0_i32_2] : memref<8x128xf32, #tpu.memory_space<vmem>> -> memref<1x128xf32, #tpu.memory_space<vmem>>
    %3 = tpu.memref_slice %arg11[%c0_i32] : memref<8x!tpu.dma_semaphore, #tpu.memory_space<semaphore_mem>> -> memref<1x!tpu.dma_semaphore, #tpu.memory_space<semaphore_mem>>
    %4 = tpu.memref_squeeze %3 : memref<1x!tpu.dma_semaphore, #tpu.memory_space<semaphore_mem>> -> memref<!tpu.dma_semaphore, #tpu.memory_space<semaphore_mem>>
    tpu.enqueue_dma source(%1 : memref<1x128xf32, #tpu.memory_space<any>>) target(%2 : memref<1x128xf32, #tpu.memory_space<vmem>>) target_semaphore(%4 : memref<!tpu.dma_semaphore, #tpu.memory_space<semaphore_mem>>)
    %c1 = arith.constant 1 : index
    %5 = memref.load %arg1[%c1] : memref<8xi32, #tpu.memory_space<smem>>
    %c1_i32 = arith.constant 1 : i32
    %c0_i32_3 = arith.constant 0 : i32
    %6 = tpu.memref_slice %arg4[%5, %c0_i32_3] : memref<32x128xf32, #tpu.memory_space<any>> -> memref<1x128xf32, #tpu.memory_space<any>>
    %c1_i32_4 = arith.constant 1 : i32
    %c0_i32_5 = arith.constant 0 : i32
    %7 = tpu.memref_slice %arg10[%c1_i32_4, %c0_i32_5] : memref<8x128xf32, #tpu.memory_space<vmem>> -> memref<1x128xf32, #tpu.memory_space<vmem>>
    %8 = tpu.memref_slice %arg11[%c1_i32] : memref<8x!tpu.dma_semaphore, #tpu.memory_space<semaphore_mem>> -> memref<1x!tpu.dma_semaphore, #tpu.memory_space<semaphore_mem>>
    %9 = tpu.memref_squeeze %8 : memref<1x!tpu.dma_semaphore, #tpu.memory_space<semaphore_mem>> -> memref<!tpu.dma_semaphore, #tpu.memory_space<semaphore_mem>>
    tpu.enqueue_dma source(%6 : memref<1x128xf32, #tpu.memory_space<any>>) target(%7 : memref<1x128xf32, #tpu.memory_space<vmem>>) target_semaphore(%9 : memref<!tpu.dma_semaphore, #tpu.memory_space<semaphore_mem>>)
    %c2 = arith.constant 2 : index
    %10 = memref.load %arg1[%c2] : memref<8xi32, #tpu.memory_space<smem>>
    %c2_i32 = arith.constant 2 : i32
    %c0_i32_6 = arith.constant 0 : i32
    %11 = tpu.memref_slice %arg4[%10, %c0_i32_6] : memref<32x128xf32, #tpu.memory_space<any>> -> memref<1x128xf32, #tpu.memory_space<any>>
    %c2_i32_7 = arith.constant 2 : i32
    %c0_i32_8 = arith.constant 0 : i32
    %12 = tpu.memref_slice %arg10[%c2_i32_7, %c0_i32_8] : memref<8x128xf32, #tpu.memory_space<vmem>> -> memref<1x128xf32, #tpu.memory_space<vmem>>
    %13 = tpu.memref_slice %arg11[%c2_i32] : memref<8x!tpu.dma_semaphore, #tpu.memory_space<semaphore_mem>> -> memref<1x!tpu.dma_semaphore, #tpu.memory_space<semaphore_mem>>
    %14 = tpu.memref_squeeze %13 : memref<1x!tpu.dma_semaphore, #tpu.memory_space<semaphore_mem>> -> memref<!tpu.dma_semaphore, #tpu.memory_space<semaphore_mem>>
    tpu.enqueue_dma source(%11 : memref<1x128xf32, #tpu.memory_space<any>>) target(%12 : memref<1x128xf32, #tpu.memory_space<vmem>>) target_semaphore(%14 : memref<!tpu.dma_semaphore, #tpu.memory_space<semaphore_mem>>)
    %c3 = arith.constant 3 : index
    %15 = memref.load %arg1[%c3] : memref<8xi32, #tpu.memory_space<smem>>
    %c3_i32 = arith.constant 3 : i32
    %c0_i32_9 = arith.constant 0 : i32
    %16 = tpu.memref_slice %arg4[%15, %c0_i32_9] : memref<32x128xf32, #tpu.memory_space<any>> -> memref<1x128xf32, #tpu.memory_space<any>>
    %c3_i32_10 = arith.constant 3 : i32
    %c0_i32_11 = arith.constant 0 : i32
    %17 = tpu.memref_slice %arg10[%c3_i32_10, %c0_i32_11] : memref<8x128xf32, #tpu.memory_space<vmem>> -> memref<1x128xf32, #tpu.memory_space<vmem>>
    %18 = tpu.memref_slice %arg11[%c3_i32] : memref<8x!tpu.dma_semaphore, #tpu.memory_space<semaphore_mem>> -> memref<1x!tpu.dma_semaphore, #tpu.memory_space<semaphore_mem>>
    %19 = tpu.memref_squeeze %18 : memref<1x!tpu.dma_semaphore, #tpu.memory_space<semaphore_mem>> -> memref<!tpu.dma_semaphore, #tpu.memory_space<semaphore_mem>>
    tpu.enqueue_dma source(%16 : memref<1x128xf32, #tpu.memory_space<any>>) target(%17 : memref<1x128xf32, #tpu.memory_space<vmem>>) target_semaphore(%19 : memref<!tpu.dma_semaphore, #tpu.memory_space<semaphore_mem>>)
    %c4 = arith.constant 4 : index
    %20 = memref.load %arg1[%c4] : memref<8xi32, #tpu.memory_space<smem>>
    %c4_i32 = arith.constant 4 : i32
    %c0_i32_12 = arith.constant 0 : i32
    %21 = tpu.memref_slice %arg4[%20, %c0_i32_12] : memref<32x128xf32, #tpu.memory_space<any>> -> memref<1x128xf32, #tpu.memory_space<any>>
    %c4_i32_13 = arith.constant 4 : i32
    %c0_i32_14 = arith.constant 0 : i32
    %22 = tpu.memref_slice %arg10[%c4_i32_13, %c0_i32_14] : memref<8x128xf32, #tpu.memory_space<vmem>> -> memref<1x128xf32, #tpu.memory_space<vmem>>
    %23 = tpu.memref_slice %arg11[%c4_i32] : memref<8x!tpu.dma_semaphore, #tpu.memory_space<semaphore_mem>> -> memref<1x!tpu.dma_semaphore, #tpu.memory_space<semaphore_mem>>
    %24 = tpu.memref_squeeze %23 : memref<1x!tpu.dma_semaphore, #tpu.memory_space<semaphore_mem>> -> memref<!tpu.dma_semaphore, #tpu.memory_space<semaphore_mem>>
    tpu.enqueue_dma source(%21 : memref<1x128xf32, #tpu.memory_space<any>>) target(%22 : memref<1x128xf32, #tpu.memory_space<vmem>>) target_semaphore(%24 : memref<!tpu.dma_semaphore, #tpu.memory_space<semaphore_mem>>)
    %c5 = arith.constant 5 : index
    %25 = memref.load %arg1[%c5] : memref<8xi32, #tpu.memory_space<smem>>
    %c5_i32 = arith.constant 5 : i32
    %c0_i32_15 = arith.constant 0 : i32
    %26 = tpu.memref_slice %arg4[%25, %c0_i32_15] : memref<32x128xf32, #tpu.memory_space<any>> -> memref<1x128xf32, #tpu.memory_space<any>>
    %c5_i32_16 = arith.constant 5 : i32
    %c0_i32_17 = arith.constant 0 : i32
    %27 = tpu.memref_slice %arg10[%c5_i32_16, %c0_i32_17] : memref<8x128xf32, #tpu.memory_space<vmem>> -> memref<1x128xf32, #tpu.memory_space<vmem>>
    %28 = tpu.memref_slice %arg11[%c5_i32] : memref<8x!tpu.dma_semaphore, #tpu.memory_space<semaphore_mem>> -> memref<1x!tpu.dma_semaphore, #tpu.memory_space<semaphore_mem>>
    %29 = tpu.memref_squeeze %28 : memref<1x!tpu.dma_semaphore, #tpu.memory_space<semaphore_mem>> -> memref<!tpu.dma_semaphore, #tpu.memory_space<semaphore_mem>>
    tpu.enqueue_dma source(%26 : memref<1x128xf32, #tpu.memory_space<any>>) target(%27 : memref<1x128xf32, #tpu.memory_space<vmem>>) target_semaphore(%29 : memref<!tpu.dma_semaphore, #tpu.memory_space<semaphore_mem>>)
    %c6 = arith.constant 6 : index
    %30 = memref.load %arg1[%c6] : memref<8xi32, #tpu.memory_space<smem>>
    %c6_i32 = arith.constant 6 : i32
    %c0_i32_18 = arith.constant 0 : i32
    %31 = tpu.memref_slice %arg4[%30, %c0_i32_18] : memref<32x128xf32, #tpu.memory_space<any>> -> memref<1x128xf32, #tpu.memory_space<any>>
    %c6_i32_19 = arith.constant 6 : i32
    %c0_i32_20 = arith.constant 0 : i32
    %32 = tpu.memref_slice %arg10[%c6_i32_19, %c0_i32_20] : memref<8x128xf32, #tpu.memory_space<vmem>> -> memref<1x128xf32, #tpu.memory_space<vmem>>
    %33 = tpu.memref_slice %arg11[%c6_i32] : memref<8x!tpu.dma_semaphore, #tpu.memory_space<semaphore_mem>> -> memref<1x!tpu.dma_semaphore, #tpu.memory_space<semaphore_mem>>
    %34 = tpu.memref_squeeze %33 : memref<1x!tpu.dma_semaphore, #tpu.memory_space<semaphore_mem>> -> memref<!tpu.dma_semaphore, #tpu.memory_space<semaphore_mem>>
    tpu.enqueue_dma source(%31 : memref<1x128xf32, #tpu.memory_space<any>>) target(%32 : memref<1x128xf32, #tpu.memory_space<vmem>>) target_semaphore(%34 : memref<!tpu.dma_semaphore, #tpu.memory_space<semaphore_mem>>)
    %c7 = arith.constant 7 : index
    %35 = memref.load %arg1[%c7] : memref<8xi32, #tpu.memory_space<smem>>
    %c7_i32 = arith.constant 7 : i32
    %c0_i32_21 = arith.constant 0 : i32
    %36 = tpu.memref_slice %arg4[%35, %c0_i32_21] : memref<32x128xf32, #tpu.memory_space<any>> -> memref<1x128xf32, #tpu.memory_space<any>>
    %c7_i32_22 = arith.constant 7 : i32
    %c0_i32_23 = arith.constant 0 : i32
    %37 = tpu.memref_slice %arg10[%c7_i32_22, %c0_i32_23] : memref<8x128xf32, #tpu.memory_space<vmem>> -> memref<1x128xf32, #tpu.memory_space<vmem>>
    %38 = tpu.memref_slice %arg11[%c7_i32] : memref<8x!tpu.dma_semaphore, #tpu.memory_space<semaphore_mem>> -> memref<1x!tpu.dma_semaphore, #tpu.memory_space<semaphore_mem>>
    %39 = tpu.memref_squeeze %38 : memref<1x!tpu.dma_semaphore, #tpu.memory_space<semaphore_mem>> -> memref<!tpu.dma_semaphore, #tpu.memory_space<semaphore_mem>>
    tpu.enqueue_dma source(%36 : memref<1x128xf32, #tpu.memory_space<any>>) target(%37 : memref<1x128xf32, #tpu.memory_space<vmem>>) target_semaphore(%39 : memref<!tpu.dma_semaphore, #tpu.memory_space<semaphore_mem>>)
    %c0_i32_24 = arith.constant 0 : i32
    %c8_i32 = arith.constant 8 : i32
    %40 = arith.addi %c0_i32_24, %c8_i32 : i32
    %c1_i32_25 = arith.constant 1 : i32
    scf.for %arg12 = %c0_i32_24 to %40 step %c1_i32_25  : i32 {
      %c1_i32_47 = arith.constant 1 : i32
      %76 = arith.muli %arg12, %c1_i32_47 : i32
      %c0_i32_48 = arith.constant 0 : i32
      %77 = arith.addi %c0_i32_48, %76 : i32
      %c8_i32_49 = arith.constant 8 : i32
      %c0_i32_50 = arith.constant 0 : i32
      %78 = arith.cmpi eq, %c8_i32_49, %c0_i32_50 : i32
      %c1_i32_51 = arith.constant 1 : i32
      %79 = arith.select %78, %c1_i32_51, %c8_i32_49 : i32
      %80 = arith.remsi %77, %79 : i32
      %c0_i32_52 = arith.constant 0 : i32
      %81 = arith.cmpi ne, %80, %c0_i32_52 : i32
      %c0_i32_53 = arith.constant 0 : i32
      %82 = arith.cmpi slt, %80, %c0_i32_53 : i32
      %c0_i32_54 = arith.constant 0 : i32
      %83 = arith.cmpi slt, %79, %c0_i32_54 : i32
      %84 = arith.xori %82, %83 : i1
      %85 = arith.andi %84, %81 : i1
      %86 = arith.addi %80, %79 : i32
      %87 = arith.select %85, %86, %80 : i32
      %c0_i32_55 = arith.constant 0 : i32
      %c0_i32_56 = arith.constant 0 : i32
      %88 = tpu.memref_slice %arg4[%c0_i32_55, %c0_i32_56] : memref<32x128xf32, #tpu.memory_space<any>> -> memref<1x128xf32, #tpu.memory_space<any>>
      %c0_i32_57 = arith.constant 0 : i32
      %89 = tpu.memref_slice %arg10[%77, %c0_i32_57] : memref<8x128xf32, #tpu.memory_space<vmem>> -> memref<1x128xf32, #tpu.memory_space<vmem>>
      %90 = tpu.memref_slice %arg11[%87] : memref<8x!tpu.dma_semaphore, #tpu.memory_space<semaphore_mem>> -> memref<1x!tpu.dma_semaphore, #tpu.memory_space<semaphore_mem>>
      %91 = tpu.memref_squeeze %90 : memref<1x!tpu.dma_semaphore, #tpu.memory_space<semaphore_mem>> -> memref<!tpu.dma_semaphore, #tpu.memory_space<semaphore_mem>>
      tpu.wait_dma2 semaphore(%91 : memref<!tpu.dma_semaphore, #tpu.memory_space<semaphore_mem>>) src(%88 : memref<1x128xf32, #tpu.memory_space<any>>) dst(%89 : memref<1x128xf32, #tpu.memory_space<vmem>>)
      %c8_i32_58 = arith.constant 8 : i32
      %92 = arith.addi %77, %c8_i32_58 : i32
      %c8_i32_59 = arith.constant 8 : i32
      %93 = arith.cmpi slt, %92, %c8_i32_59 : i32
      %94 = arith.extui %93 : i1 to i32
      %c0_i32_60 = arith.constant 0 : i32
      %95 = arith.cmpi ne, %94, %c0_i32_60 : i32
      scf.if %95 {
        %c8_i32_61 = arith.constant 8 : i32
        %96 = arith.addi %77, %c8_i32_61 : i32
        %97 = arith.index_cast %96 : i32 to index
        %98 = memref.load %arg1[%97] : memref<8xi32, #tpu.memory_space<smem>>
        %c8_i32_62 = arith.constant 8 : i32
        %c0_i32_63 = arith.constant 0 : i32
        %99 = arith.cmpi eq, %c8_i32_62, %c0_i32_63 : i32
        %c1_i32_64 = arith.constant 1 : i32
        %100 = arith.select %99, %c1_i32_64, %c8_i32_62 : i32
        %101 = arith.remsi %96, %100 : i32
        %c0_i32_65 = arith.constant 0 : i32
        %102 = arith.cmpi ne, %101, %c0_i32_65 : i32
        %c0_i32_66 = arith.constant 0 : i32
        %103 = arith.cmpi slt, %101, %c0_i32_66 : i32
        %c0_i32_67 = arith.constant 0 : i32
        %104 = arith.cmpi slt, %100, %c0_i32_67 : i32
        %105 = arith.xori %103, %104 : i1
        %106 = arith.andi %105, %102 : i1
        %107 = arith.addi %101, %100 : i32
        %108 = arith.select %106, %107, %101 : i32
        %c0_i32_68 = arith.constant 0 : i32
        %109 = tpu.memref_slice %arg4[%98, %c0_i32_68] : memref<32x128xf32, #tpu.memory_space<any>> -> memref<1x128xf32, #tpu.memory_space<any>>
        %c0_i32_69 = arith.constant 0 : i32
        %110 = tpu.memref_slice %arg10[%96, %c0_i32_69] : memref<8x128xf32, #tpu.memory_space<vmem>> -> memref<1x128xf32, #tpu.memory_space<vmem>>
        %111 = tpu.memref_slice %arg11[%108] : memref<8x!tpu.dma_semaphore, #tpu.memory_space<semaphore_mem>> -> memref<1x!tpu.dma_semaphore, #tpu.memory_space<semaphore_mem>>
        %112 = tpu.memref_squeeze %111 : memref<1x!tpu.dma_semaphore, #tpu.memory_space<semaphore_mem>> -> memref<!tpu.dma_semaphore, #tpu.memory_space<semaphore_mem>>
        tpu.enqueue_dma source(%109 : memref<1x128xf32, #tpu.memory_space<any>>) target(%110 : memref<1x128xf32, #tpu.memory_space<vmem>>) target_semaphore(%112 : memref<!tpu.dma_semaphore, #tpu.memory_space<semaphore_mem>>)
      } else {
      }
    }
    %c8_i32_26 = arith.constant 8 : i32
    %c0_27 = arith.constant 0 : index
    %c0_28 = arith.constant 0 : index
    %41 = vector.load %arg2[%c0_27, %c0_28] : memref<8x1xi32, #tpu.memory_space<vmem>>, vector<8x1xi32>
    %c0_29 = arith.constant 0 : index
    %c0_30 = arith.constant 0 : index
    %42 = vector.load %arg3[%c0_29, %c0_30] : memref<8x1xi32, #tpu.memory_space<vmem>>, vector<8x1xi32>
    %43 = tpu.iota {dimensions = array<i32: 1>} : vector<8x8xi32>
    %44 = vector.broadcast %41 : vector<8x1xi32> to vector<8x8xi32>
    %45 = arith.cmpi sge, %43, %44 : vector<8x8xi32>
    %46 = vector.broadcast %42 : vector<8x1xi32> to vector<8x8xi32>
    %47 = arith.cmpi slt, %43, %46 : vector<8x8xi32>
    %48 = arith.andi %45, %47 : vector<8x8xi1>
    %49 = arith.extui %48 : vector<8x8xi1> to vector<8x8xi32>
    %50 = arith.sitofp %49 : vector<8x8xi32> to vector<8x8xf32>
    %51 = arith.truncf %50 : vector<8x8xf32> to vector<8x8xbf16>
    %52 = arith.subi %42, %41 : vector<8x1xi32>
    %53 = arith.sitofp %52 : vector<8x1xi32> to vector<8x1xf32>
    %cst = arith.constant 1.000000e+00 : f32
    %54 = vector.broadcast %cst : f32 to vector<8x1xf32>
    %55 = arith.maximumf %53, %54 : vector<8x1xf32>
    %c0_31 = arith.constant 0 : index
    %c0_32 = arith.constant 0 : index
    %56 = vector.load %arg10[%c0_31, %c0_32] : memref<8x128xf32, #tpu.memory_space<vmem>>, vector<8x128xf32>
    %57 = arith.truncf %56 : vector<8x128xf32> to vector<8x128xbf16>
    %cst_33 = arith.constant dense<0.000000e+00> : vector<8x128xf32>
    %58 = tpu.matmul %51, %57, %cst_33 {dimension_numbers = #tpu.dot_dimension_numbers<[1], [0], [0], [1], [0, 0, 1, 1], [], []>} : vector<8x8xbf16>, vector<8x128xbf16>, vector<8x128xf32> -> vector<8x128xf32>
    %59 = vector.broadcast %55 : vector<8x1xf32> to vector<8x128xf32>
    %60 = arith.divf %58, %59 : vector<8x128xf32>
    %61 = arith.truncf %60 : vector<8x128xf32> to vector<8x128xbf16>
    %c0_34 = arith.constant 0 : index
    %c0_35 = arith.constant 0 : index
    %62 = vector.load %arg5[%c0_34, %c0_35] : memref<128x128xbf16, #tpu.memory_space<vmem>>, vector<128x128xbf16>
    %cst_36 = arith.constant dense<0.000000e+00> : vector<8x128xf32>
    %63 = tpu.matmul %61, %62, %cst_36 {dimension_numbers = #tpu.dot_dimension_numbers<[1], [0], [0], [1], [0, 0, 1, 1], [], []>} : vector<8x128xbf16>, vector<128x128xbf16>, vector<8x128xf32> -> vector<8x128xf32>
    %c0_37 = arith.constant 0 : index
    %c0_38 = arith.constant 0 : index
    %64 = vector.load %arg6[%c0_37, %c0_38] : memref<1x128xf32, #tpu.memory_space<vmem>>, vector<1x128xf32>
    %65 = vector.broadcast %64 : vector<1x128xf32> to vector<8x128xf32>
    %66 = arith.addf %63, %65 : vector<8x128xf32>
    %cst_39 = arith.constant 0.000000e+00 : f32
    %67 = vector.broadcast %cst_39 : f32 to vector<8x128xf32>
    %68 = arith.maximumf %66, %67 : vector<8x128xf32>
    %69 = arith.truncf %68 : vector<8x128xf32> to vector<8x128xbf16>
    %c0_40 = arith.constant 0 : index
    %c0_41 = arith.constant 0 : index
    %70 = vector.load %arg7[%c0_40, %c0_41] : memref<128x128xbf16, #tpu.memory_space<vmem>>, vector<128x128xbf16>
    %cst_42 = arith.constant dense<0.000000e+00> : vector<8x128xf32>
    %71 = tpu.matmul %69, %70, %cst_42 {dimension_numbers = #tpu.dot_dimension_numbers<[1], [0], [0], [1], [0, 0, 1, 1], [], []>} : vector<8x128xbf16>, vector<128x128xbf16>, vector<8x128xf32> -> vector<8x128xf32>
    %c0_43 = arith.constant 0 : index
    %c0_44 = arith.constant 0 : index
    %72 = vector.load %arg8[%c0_43, %c0_44] : memref<1x128xf32, #tpu.memory_space<vmem>>, vector<1x128xf32>
    %73 = vector.broadcast %72 : vector<1x128xf32> to vector<8x128xf32>
    %74 = arith.addf %71, %73 : vector<8x128xf32>
    %c0_45 = arith.constant 0 : index
    %c0_46 = arith.constant 0 : index
    %75 = vector.load %arg9[%c0_45, %c0_46] : memref<8x128xf32, #tpu.memory_space<vmem>>, vector<8x128xf32>
    tpu.vector_store %arg9[%c0_45, %c0_46], %74 {strides = array<i32>} : memref<8x128xf32, #tpu.memory_space<vmem>>, vector<8x128xf32>,
    return
  }
  func.func @transform_0(%arg0: i32, %arg1: memref<8xi32, #tpu.memory_space<smem>>) -> (i32, i32) {
    %c0_i32 = arith.constant 0 : i32
    %c0_i32_0 = arith.constant 0 : i32
    %c0_i32_1 = arith.constant 0 : i32
    return %c0_i32, %c0_i32_0 : i32, i32
  }
  func.func @transform_1(%arg0: i32, %arg1: memref<8xi32, #tpu.memory_space<smem>>) -> (i32, i32) {
    %c0_i32 = arith.constant 0 : i32
    %c0_i32_0 = arith.constant 0 : i32
    %c0_i32_1 = arith.constant 0 : i32
    return %c0_i32, %c0_i32_0 : i32, i32
  }
  func.func @transform_3(%arg0: i32, %arg1: memref<8xi32, #tpu.memory_space<smem>>) -> (i32, i32) {
    %c0_i32 = arith.constant 0 : i32
    %c0_i32_0 = arith.constant 0 : i32
    %c0_i32_1 = arith.constant 0 : i32
    return %c0_i32, %c0_i32_0 : i32, i32
  }
  func.func @transform_4(%arg0: i32, %arg1: memref<8xi32, #tpu.memory_space<smem>>) -> (i32, i32) {
    %c0_i32 = arith.constant 0 : i32
    %c0_i32_0 = arith.constant 0 : i32
    %c0_i32_1 = arith.constant 0 : i32
    return %c0_i32, %c0_i32_0 : i32, i32
  }
  func.func @transform_5(%arg0: i32, %arg1: memref<8xi32, #tpu.memory_space<smem>>) -> (i32, i32) {
    %c0_i32 = arith.constant 0 : i32
    %c0_i32_0 = arith.constant 0 : i32
    %c0_i32_1 = arith.constant 0 : i32
    return %c0_i32, %c0_i32_0 : i32, i32
  }
  func.func @transform_6(%arg0: i32, %arg1: memref<8xi32, #tpu.memory_space<smem>>) -> (i32, i32) {
    %c0_i32 = arith.constant 0 : i32
    %c0_i32_0 = arith.constant 0 : i32
    %c0_i32_1 = arith.constant 0 : i32
    return %c0_i32, %c0_i32_0 : i32, i32
  }
  func.func @transform_7(%arg0: i32, %arg1: memref<8xi32, #tpu.memory_space<smem>>) -> (i32, i32) {
    %c0_i32 = arith.constant 0 : i32
    %c0_i32_0 = arith.constant 0 : i32
    %c0_i32_1 = arith.constant 0 : i32
    return %c0_i32, %c0_i32_0 : i32, i32
  }
}

</mosaic_0001>

<bundles_post_ra>
// kernel: tpu_custom_call.1
= control target key start
LH: loop header
LB: loop body
LE: loop exit
PB: predicated region body
PF: predicated region fallthrough
CT: control target
= control target key end

     0   :  { %s1037_s30 = smov [#allocation5]   ;;  %s1266_s0 = inlined_call_operand.vmem [shape: s32[8], index: 0, kind: input, shape index: {}]   ;;  %s1267_s1 = inlined_call_operand.vmem [shape: s32[8,1], index: 1, kind: input, shape index: {}]   ;;  %s1268_s2 = inlined_call_operand.vmem [shape: s32[8,1], index: 2, kind: input, shape index: {}]   ;;  %s1269_s3 = inlined_call_operand.hbm [shape: f32[32,128], index: 3, kind: input, shape index: {}]   ;;  %s1270_s4 = inlined_call_operand.hbm [shape: bf16[128,128], index: 4, kind: input, shape index: {}]   ;;  %s1271_s5 = inlined_call_operand.vmem [shape: f32[1,128], index: 5, kind: input, shape index: {}]   ;;  %s1272_s6 = inlined_call_operand.hbm [shape: bf16[128,128], index: 6, kind: input, shape index: {}]   ;;  %s1273_s7 = inlined_call_operand.vmem [shape: f32[1,128], index: 7, kind: input, shape index: {}]   ;;  %s1274_s8 = inlined_call_operand.hbm [shape: f32[8,128], index: 8, kind: output, shape index: {}]  }
   0x1   :  { %s14_s29 = sshll.u32 %s1266_s0, 4  ;;  %s15_s29 = int_to_ptr.vmem [resolvable:$true] %s14_s29 }
   0x2   :  { %17 = dma.vmem_to_smem %s15_s29, 16, %s1037_s30, [#allocation4] }
   0x3   :  { %1023 = dma.done.wait [#allocation4], 16 }
   0x4   :  { %1024 = vsyncadd [#allocation4], 4294967280 }
   0x5   :  { %20 = sfence }
   0x6   :  { %21 = vsyncpa [#allocation7], 0 }
   0x7   :  { %22 = vsyncpa [#allocation10], 0 }
   0x8   :  { %23 = vsyncpa [#allocation8], 0  ;;  %s32_s11 = sshll.u32 %s1270_s4, 4  ;;  %s1038_s12 = smov [#allocation6]   ;;  %s33_s11 = int_to_ptr.hbm [resolvable:$true] %s32_s11 }
   0x9   :  { %s34_s13 = sshll.u32 %s1038_s12, 4  ;;  %s47_s0 = sshll.u32 %s1272_s6, 4  ;;  %s35_s13 = int_to_ptr.vmem [resolvable:$true] %s34_s13  ;;  %s48_s0 = int_to_ptr.hbm [resolvable:$true] %s47_s0 }
   0xa   :  { %s1039_s16 = smov 64   ;;  %s1040_s17 = smov 4  }
   0xb   :  { %40 = dma.hbm_to_vmem [thread:$0]  %s33_s11, 1024, %s35_s13, [#allocation7], %s1039_s16, %s1039_s16, %s1040_s17  }
   0xc   :  { %s1041_s18 = smov [#allocation9]  }
   0xd   :  { %s49_s19 = sshll.u32 %s1041_s18, 4  ;;  %s50_s19 = int_to_ptr.vmem [resolvable:$true] %s49_s19 }
   0xe   :  { %55 = dma.hbm_to_vmem [thread:$0]  %s48_s0, 1024, %s50_s19, [#allocation10], %s1039_s16, %s1039_s16, %s1040_s17  }
   0xf   :  { %1025 = dma.done.wait [#allocation7], 1024  }
  0x10   :  { %1026 = vsyncadd [#allocation7], 4294966272 }
  0x11   :  { %1027 = dma.done.wait [#allocation10], 1024  }
  0x12   :  { %1028 = vsyncadd [#allocation10], 4294966272  ;;  %s67_s4 = sld [smem:[#allocation5]]  ;;  %s1042_s20 = smov [#allocation2]  }
  0x13   :  { %s1108_s21 = sshll.u32 %s1042_s20, 4  ;;  %s576_s22 = sld [smem:[#allocation5 + $0x1]]  ;;  %s79_s21 = int_to_ptr.vmem [resolvable:$true] %s1108_s21 }
  0x14   :  { %s1043_s6 = smov [#allocation2 + $0x1]   ;;  %s1113_s24 = sld [smem:[#allocation5 + $0x2]] }
  0x15   :  { %s1111_s23 = sshll.u32 %s1043_s6, 4  ;;  %s1044_s25 = smov [#allocation2 + $0x2]   ;;  %s96_s23 = int_to_ptr.vmem [resolvable:$true] %s1111_s23 }
  0x16   :  { %s1116_s26 = sshll.u32 %s1044_s25, 4  ;;  %s1118_s27 = sld [smem:[#allocation5 + $0x3]]  ;;  %s113_s26 = int_to_ptr.vmem [resolvable:$true] %s1116_s26 }
  0x17   :  { %s1045_s9 = smov [#allocation2 + $0x3]   ;;  %s1132_s19 = scalar_lea.hbm %s1269_s3, 32 }
  0x18   :  { %s68_s30 = scalar_lea.hbm %s1269_s3, %s67_s4  ;;  %s1124_s10 = sshll.u32 %s1045_s9, 4  ;;  %s130_s10 = int_to_ptr.vmem [resolvable:$true] %s1124_s10 }
  0x19   :  { %s76_s11 = sshll.u32 %s68_s30, 4  ;;  %s83_s14 = scalar_lea.hbm %s1269_s3, %s576_s22  ;;  %s77_s11 = int_to_ptr.hbm [resolvable:$true] %s76_s11 }
  0x1a   :  { %s93_s15 = sshll.u32 %s83_s14, 4  ;;  %s775_s0 = sshra.s32 %s77_s11, 4  ;;  %s776_s0 = int_to_ptr.hbm [resolvable:$true] %s775_s0  ;;  %s94_s15 = int_to_ptr.hbm [resolvable:$true] %s93_s15 }
  0x1b   :  { %s777_s16 = scalar_lea.hbm %s776_s0, 1  ;;  %p780_p1 = scmp.lt.s32.totalorder %s776_s0, %s1269_s3 }
  0x1c   :  { %p778_p0 = scmp.ne.s32.totalorder %s776_s0, %s777_s16  ;;  %p781_p2 = scmp.lt.s32.totalorder %s1132_s19, %s777_s16 }
  0x1e   :  { %p782_p3 = por %p781_p2, %p780_p1 }
  0x20   :  { %p783_p4 = pnand %p782_p3, %p778_p0 }
  0x22   :  { %786 = shalt.err (!%p783_p4)  }
  0x23   :  { %81 = dma.hbm_to_vmem [thread:$0]  %s77_s11, 16, %s79_s21, [#allocation3] }
  0x24   :  { %s100_s25 = scalar_lea.hbm %s1269_s3, %s1113_s24  ;;  %s799_s28 = sshra.s32 %s94_s15, 4  ;;  %s800_s28 = int_to_ptr.hbm [resolvable:$true] %s799_s28 }
  0x25   :  { %s801_s29 = scalar_lea.hbm %s800_s28, 1  ;;  %p804_p6 = scmp.lt.s32.totalorder %s800_s28, %s1269_s3 }
  0x26   :  { %p802_p5 = scmp.ne.s32.totalorder %s800_s28, %s801_s29  ;;  %p805_p7 = scmp.lt.s32.totalorder %s1132_s19, %s801_s29 }
  0x28   :  { %p806_p8 = por %p805_p7, %p804_p6 }
  0x2a   :  { %p807_p9 = pnand %p806_p8, %p802_p5 }
  0x2c   :  { %810 = shalt.err (!%p807_p9)  }
  0x2d   :  { %98 = dma.hbm_to_vmem [thread:$0]  %s94_s15, 16, %s96_s23, [#allocation3 + $0x1] }
  0x2e   :  { %s110_s21 = sshll.u32 %s100_s25, 4  ;;  %s117_s12 = scalar_lea.hbm %s1269_s3, %s1118_s27  ;;  %s111_s21 = int_to_ptr.hbm [resolvable:$true] %s110_s21 }
  0x2f   :  { %s127_s13 = sshll.u32 %s117_s12, 4  ;;  %s823_s14 = sshra.s32 %s111_s21, 4  ;;  %s824_s14 = int_to_ptr.hbm [resolvable:$true] %s823_s14  ;;  %s128_s13 = int_to_ptr.hbm [resolvable:$true] %s127_s13 }
  0x30   :  { %s825_s0 = scalar_lea.hbm %s824_s14, 1  ;;  %p828_p11 = scmp.lt.s32.totalorder %s824_s14, %s1269_s3 }
  0x31   :  { %p826_p10 = scmp.ne.s32.totalorder %s824_s14, %s825_s0  ;;  %p829_p12 = scmp.lt.s32.totalorder %s1132_s19, %s825_s0 }
  0x33   :  { %p830_p13 = por %p829_p12, %p828_p11 }
  0x35   :  { %p831_p0 = pnand %p830_p13, %p826_p10 }
  0x37   :  { %834 = shalt.err (!%p831_p0)  }
  0x38   :  { %115 = dma.hbm_to_vmem [thread:$0]  %s111_s21, 16, %s113_s26, [#allocation3 + $0x2] }
  0x39   :  { %s847_s23 = sshra.s32 %s128_s13, 4  ;;  %s848_s23 = int_to_ptr.hbm [resolvable:$true] %s847_s23 }
  0x3a   :  { %s849_s27 = scalar_lea.hbm %s848_s23, 1  ;;  %p852_p2 = scmp.lt.s32.totalorder %s848_s23, %s1269_s3 }
  0x3b   :  { %p850_p1 = scmp.ne.s32.totalorder %s848_s23, %s849_s27  ;;  %p853_p3 = scmp.lt.s32.totalorder %s1132_s19, %s849_s27 }
  0x3d   :  { %p854_p4 = por %p853_p3, %p852_p2 }
  0x3f   :  { %p855_p5 = pnand %p854_p4, %p850_p1 }
  0x41   :  { %858 = shalt.err (!%p855_p5)  }
  0x42   :  { %132 = dma.hbm_to_vmem [thread:$0]  %s128_s13, 16, %s130_s10, [#allocation3 + $0x3] }
  0x43   :  { %s579_s4 = sld [smem:[#allocation5 + $0x4]]  ;;  %s1046_s20 = smov [#allocation2 + $0x4]  }
  0x44   :  { %s146_s22 = sshll.u32 %s1046_s20, 4  ;;  %s580_s6 = sld [smem:[#allocation5 + $0x5]]  ;;  %s147_s22 = int_to_ptr.vmem [resolvable:$true] %s146_s22 }
  0x45   :  { %s1047_s26 = smov [#allocation2 + $0x5]   ;;  %s1165_s28 = sld [smem:[#allocation5 + $0x6]] }
  0x46   :  { %s1163_s25 = sshll.u32 %s1047_s26, 4  ;;  %s1048_s29 = smov [#allocation2 + $0x6]   ;;  %s164_s25 = int_to_ptr.vmem [resolvable:$true] %s1163_s25 }
  0x47   :  { %s1168_s30 = sshll.u32 %s1048_s29, 4  ;;  %s1170_s9 = sld [smem:[#allocation5 + $0x7]]  ;;  %s181_s30 = int_to_ptr.vmem [resolvable:$true] %s1168_s30 }
  0x49   :  { %s134_s11 = scalar_lea.hbm %s1269_s3, %s579_s4 }
  0x4a   :  { %s144_s24 = sshll.u32 %s134_s11, 4  ;;  %s151_s14 = scalar_lea.hbm %s1269_s3, %s580_s6  ;;  %s145_s24 = int_to_ptr.hbm [resolvable:$true] %s144_s24 }
  0x4b   :  { %s161_s0 = sshll.u32 %s151_s14, 4  ;;  %s871_s16 = sshra.s32 %s145_s24, 4  ;;  %s872_s16 = int_to_ptr.hbm [resolvable:$true] %s871_s16  ;;  %s162_s0 = int_to_ptr.hbm [resolvable:$true] %s161_s0 }
  0x4c   :  { %s873_s17 = scalar_lea.hbm %s872_s16, 1  ;;  %p876_p7 = scmp.lt.s32.totalorder %s872_s16, %s1269_s3 }
  0x4d   :  { %p874_p6 = scmp.ne.s32.totalorder %s872_s16, %s873_s17  ;;  %p877_p8 = scmp.lt.s32.totalorder %s1132_s19, %s873_s17 }
  0x4f   :  { %p878_p9 = por %p877_p8, %p876_p7 }
  0x51   :  { %p879_p10 = pnand %p878_p9, %p874_p6 }
  0x53   :  { %882 = shalt.err (!%p879_p10)  }
  0x54   :  { %149 = dma.hbm_to_vmem [thread:$0]  %s145_s24, 16, %s147_s22, [#allocation3 + $0x4] }
  0x55   :  { %s168_s4 = scalar_lea.hbm %s1269_s3, %s1165_s28  ;;  %s895_s20 = sshra.s32 %s162_s0, 4  ;;  %s896_s20 = int_to_ptr.hbm [resolvable:$true] %s895_s20 }
  0x56   :  { %s897_s6 = scalar_lea.hbm %s896_s20, 1  ;;  %p900_p12 = scmp.lt.s32.totalorder %s896_s20, %s1269_s3 }
  0x57   :  { %p898_p11 = scmp.ne.s32.totalorder %s896_s20, %s897_s6  ;;  %p901_p13 = scmp.lt.s32.totalorder %s1132_s19, %s897_s6 }
  0x59   :  { %p902_p0 = por %p901_p13, %p900_p12 }
  0x5b   :  { %p903_p1 = pnand %p902_p0, %p898_p11 }
  0x5d   :  { %906 = shalt.err (!%p903_p1)  }
  0x5e   :  { %166 = dma.hbm_to_vmem [thread:$0]  %s162_s0, 16, %s164_s25, [#allocation3 + $0x5] }
  0x5f   :  { %s178_s22 = sshll.u32 %s168_s4, 4  ;;  %s185_s21 = scalar_lea.hbm %s1269_s3, %s1170_s9  ;;  %s179_s22 = int_to_ptr.hbm [resolvable:$true] %s178_s22 }
  0x60   :  { %s195_s11 = sshll.u32 %s185_s21, 4  ;;  %s919_s24 = sshra.s32 %s179_s22, 4  ;;  %s920_s24 = int_to_ptr.hbm [resolvable:$true] %s919_s24  ;;  %s196_s11 = int_to_ptr.hbm [resolvable:$true] %s195_s11 }
  0x61   :  { %s921_s12 = scalar_lea.hbm %s920_s24, 1  ;;  %p924_p3 = scmp.lt.s32.totalorder %s920_s24, %s1269_s3 }
  0x62   :  { %p922_p2 = scmp.ne.s32.totalorder %s920_s24, %s921_s12  ;;  %p925_p4 = scmp.lt.s32.totalorder %s1132_s19, %s921_s12 }
  0x64   :  { %p926_p5 = por %p925_p4, %p924_p3 }
  0x66   :  { %p927_p6 = pnand %p926_p5, %p922_p2 }
  0x68   :  { %930 = shalt.err (!%p927_p6)  }
  0x69   :  { %183 = dma.hbm_to_vmem [thread:$0]  %s179_s22, 16, %s181_s30, [#allocation3 + $0x6] }
  0x6a   :  { %s1049_s25 = smov [#allocation2 + $0x7]   ;;  %s943_s0 = sshra.s32 %s196_s11, 4  ;;  %s944_s0 = int_to_ptr.hbm [resolvable:$true] %s943_s0 }
  0x6b   :  { %s197_s9 = sshll.u32 %s1049_s25, 4  ;;  %s945_s16 = scalar_lea.hbm %s944_s0, 1  ;;  %s198_s9 = int_to_ptr.vmem [resolvable:$true] %s197_s9 }
  0x6c   :  { %p946_p7 = scmp.ne.s32.totalorder %s944_s0, %s945_s16  ;;  %p948_p8 = scmp.lt.s32.totalorder %s944_s0, %s1269_s3 }
  0x6d   :  { %p949_p9 = scmp.lt.s32.totalorder %s1132_s19, %s945_s16 }
  0x6f   :  { %p950_p10 = por %p949_p9, %p948_p8 }
  0x71   :  { %p951_p11 = pnand %p950_p10, %p946_p7 }
  0x73   :  { %954 = shalt.err (!%p951_p11)  }
  0x74   :  { %200 = dma.hbm_to_vmem [thread:$0]  %s196_s11, 16, %s198_s9, [#allocation3 + $0x7] }
  0x75   :  { %s1207_s27 = smov 0  }
  0x76 LB: > { %p207_p12 = scmp.lt.s32.totalorder %s1035_s27, 0  ;;  %s208_s30 = ssub.s32 0, %s1035_s27  ;;  %s1035_s27 = sphi %s1207_s27, %s206_s27  }
  0x77   : > { %s583_s15 = smin.u32 %s1035_s27, %s208_s30 }
  0x78   : > { %s210_s18 = sand.u32 7, %s583_s15  }
  0x79   : > { %s211_s4 = ssub.s32 0, %s210_s18 }
  0x7a   : > { %s1276_s4 = smov (!%p207_p12, %s211_s4), %s210_s18 }
  0x7b   : > { %p585_p13 = scmp.lt.s32.totalorder %s1276_s4, 0  ;;  %s217_s20 = sadd.s32 8, %s1276_s4 }
  0x7d   : > { %s1278_s20 = smov (!%p585_p13, %s217_s20), %s1276_s4 }
  0x7e   : > { %s219_s6 = scalar_lea.sflag [#allocation3], %s1278_s20 }
  0x7f   : > { %1029 = dma.done.wait %s219_s6, 16 }
  0x80   : > { %1030 = vsyncadd %s219_s6, 4294967280  ;;  %s1216_s26 = sadd.s32 8, %s1035_s27  ;;  %s568_s12 = scalar_lea.vmem [#allocation2], %s1035_s27 }
  0x81   : > { %p684_p0 = scmp.lt.s32.totalorder %s1216_s26, 8  ;;  %p229_p1 = scmp.lt.s32.totalorder %s1216_s26, 0 }
  0x82   : > { %s230_s29 = ssub.s32 0, %s1216_s26  ;;  %s569_s13 = scalar_lea.vmem %s568_s12, 8 [#allocation2] }
  0x83   : > { %s681_s22 = scalar_select %p684_p0, [#allocation5], [#allocation32] }
  0x84   : > { %s682_s10 = scalar_select %p684_p0, %s1216_s26, 0 }
  0x85   : > { %s587_s28 = smin.u32 %s230_s29, %s1216_s26  ;;  %s253_s14 = sshll.u32 %s569_s13, 4  ;;  %s254_s14 = int_to_ptr.vmem [resolvable:$true] %s253_s14 }
  0x86   : > { %s228_s21 = sld [smem:[%s681_s22 + %s682_s10]]  ;;  %s232_s11 = sand.u32 7, %s587_s28  }
  0x87   : > { %s233_s24 = ssub.s32 0, %s232_s11 }
  0x88   : > { %s1280_s24 = smov (!%p229_p1, %s233_s24), %s232_s11 }
  0x89   : > { %p589_p2 = scmp.lt.s32.totalorder %s1280_s24, 0  ;;  %s239_s16 = sadd.s32 8, %s1280_s24 }
  0x8b   : > { %s1282_s16 = smov (!%p589_p2, %s239_s16), %s1280_s24 }
  0x8c   : > { %s241_s0 = scalar_lea.hbm %s1269_s3, %s228_s21  ;;  %s243_s23 = scalar_lea.sflag [#allocation3], %s1282_s16 }
  0x8d   : > { %s1231_s17 = sshll.u32 %s241_s0, 4  ;;  %s252_s17 = int_to_ptr.hbm [resolvable:$true] %s1231_s17 }
  0x8e   : > { %s967_s30 = sshra.s32 %s252_s17, 4  ;;  %s968_s30 = int_to_ptr.hbm [resolvable:$true] %s967_s30 }
  0x8f   : > { %s969_s15 = scalar_lea.hbm %s968_s30, 1  ;;  %p974_p6 = scmp.lt.s32.totalorder %s968_s30, %s1269_s3 }
  0x90   : > { %p970_p3 = scmp.ne.s32.totalorder %s968_s30, %s969_s15  ;;  %p975_p7 = scmp.lt.s32.totalorder %s1132_s19, %s969_s15 }
  0x92   : > { %p971_p4 = pnand %p970_p3, %p684_p0  ;;  %p976_p8 = por %p975_p7, %p974_p6 }
  0x94   : > { %p972_p5 = pneg %p971_p4 }
  0x96   : > { %p977_p9 = pnand %p976_p8, %p972_p5 }
  0x98   : > { %980 = shalt.err (!%p977_p9)  }
  0x99   : > { %s981_s20 = sshra.s32 %s254_s14, 4  ;;  %s1050_s29 = smov [#allocation2]   ;;  %s982_s20 = int_to_ptr.vmem [resolvable:$true] %s981_s20 }
  0x9a   : > { %s983_s6 = scalar_lea.vmem %s982_s20, 1  ;;  %s987_s22 = scalar_lea.vmem %s1050_s29, 8 }
  0x9b   : > { %p984_p10 = scmp.ne.s32.totalorder %s982_s20, %s983_s6  ;;  %p988_p13 = scmp.lt.s32.totalorder %s982_s20, [#allocation2] }
  0x9c   : > { %p989_p1 = scmp.lt.s32.totalorder %s987_s22, %s983_s6 }
  0x9d   : > { %p985_p11 = pnand %p984_p10, %p684_p0 }
  0x9e   : > { %p990_p2 = por %p989_p1, %p988_p13 }
  0x9f   : > { %p986_p12 = pneg %p985_p11 }
  0xa1   : > { %p991_p3 = pnand %p990_p2, %p986_p12 }
  0xa3   : > { %994 = shalt.err (!%p991_p3)  }
  0xa4   : > { %683 = dma.hbm_to_vmem [thread:$0]  (%p684_p0), %s252_s17, 16, %s254_s14, %s243_s23 }
  0xa5   : > { %s206_s27 = sadd.s32 1, %s1035_s27  }
  0xa6   : > { %p203_p4 = scmp.ge.s32.totalorder %s206_s27, 8  }
  0xa7   :  { %v257_v0 = vld [vmem:[%s1267_s1] sm:$0xff] (%p203_p4)  ;;  %v1051_v2 = vmov (%p203_p4), 0   ;;  %vm282_vm0 = vcmask (%p203_p4), 1043456   ;;  %v670_v10 = vld [vmem:[#allocation6 + $0x30] sm:$0xff] (%p203_p4)  ;;  %v669_v11 = vld [vmem:[#allocation6 + $0x28] sm:$0xff] (%p203_p4)  ;;  %v259_v15 = vlaneseq (%p203_p4)  ;;  %v1052_v20 = vmov (%p203_p4), 0.0  }
  0xa8   :  { %205 = sbr.rel (!%p203_p4) target bundleno = 118 (0x76), region = 132  ;;  %v258_v1 = vld [vmem:[%s1268_s2] sm:$0xff] (%p203_p4)  ;;  %709 = vset.pattern.permute.xlu0 (%p203_p4), %v1051_v2  ;;  %710 = vset.pattern.permute.xlu1 (%p203_p4), %v1051_v2  ;;  %v668_v12 = vld [vmem:[#allocation6 + $0x20] sm:$0xff] (%p203_p4)  ;;  %v666_v16 = vld [vmem:[#allocation6 + $0x10] sm:$0xff] (%p203_p4)  ;;  %vm278_vm4 = vcmask (%p203_p4), 64512   ;;  %s1053_s27 = smov (%p203_p4), [#allocation11]  }
  0xa9   :  { %v273_v3 = vsub.s32 (%p203_p4), %v258_v1, %v257_v0  ;;  %262 = vperm.xlu0 (%p203_p4), %709, %v257_v0   ;;  %v276_v6 = vld [vmem:[#allocation2] sm:$0xff] (%p203_p4)  ;;  %v260_v17 = vand.u32 (%p203_p4), 127, %v259_v15  ;;  %v665_v18 = vld [vmem:[#allocation6 + $0x8] sm:$0xff] (%p203_p4)  ;;  %v664_v23 = vld [vmem:[#allocation6] sm:$0xff] (%p203_p4)  ;;  %s490_s26 = sshll.u32 (%p203_p4), %s1053_s27, 4  ;;  %s492_s13 = sshll.u32 (%p203_p4), %s1274_s8, 4  ;;  %s491_s26 = int_to_ptr.vmem [resolvable:$true] %s490_s26  ;;  %s493_s13 = int_to_ptr.hbm [resolvable:$true] %s492_s13 }
  0xaa   :  { %v277_v7 = vpack.c.bf16 (%p203_p4), %v276_v6, %v276_v6  ;;  %v671_v9 = vld [vmem:[#allocation6 + $0x38] sm:$0xff] (%p203_p4)  ;;  %v678_v27 = vld [vmem:[#allocation9 + $0x30] sm:$0xff] (%p203_p4)  ;;  %v677_v29 = vld [vmem:[#allocation9 + $0x28] sm:$0xff] (%p203_p4) }
  0xab   :  { %v274_v4 = vcvt.s32.f32 (%p203_p4), %v273_v3  ;;  %388 = vmatpush.bf16.msra.mxu1 (%p203_p4), %v671_v9  ;;  %v667_v13 = vld [vmem:[#allocation6 + $0x18] sm:$0xff] (%p203_p4)  ;;  %v676_v31 = vld [vmem:[#allocation9 + $0x20] sm:$0xff] (%p203_p4)  ;;  %v674_v37 = vld [vmem:[#allocation9 + $0x10] sm:$0xff] (%p203_p4) }
  0xac   :  { %v284_v8 = vsel (%p203_p4), %vm282_vm0, %v277_v7, 0  ;;  %v679_v25 = vld [vmem:[#allocation9 + $0x38] sm:$0xff] (%p203_p4)  ;;  %v673_v45 = vld [vmem:[#allocation9 + $0x8] sm:$0xff] (%p203_p4)  ;;  %v672_v46 = vld [vmem:[#allocation9] sm:$0xff] (%p203_p4) }
  0xad   :  { %v275_v5 = vmax.f32 %v274_v4, 1.0  ;;  %293 = vmatpush.bf16.msra.mxu0 %v284_v8  ;;  %471 = vmatpush.bf16.msra.mxu2 %v679_v25  ;;  %v675_v33 = vld [vmem:[#allocation9 + $0x18] sm:$0xff] }
  0xae   :  { %v711_v47 = vld [vmem:[%s1271_s5] ss:$0 sm:$0xff] }
  0xaf   :  { %301 = vperm.xlu1 %710, %v275_v5   ;;  %389 = vmatpush.bf16.msra.mxu1 %v670_v10  ;;  %v712_v53 = vld [vmem:[%s1273_s7] ss:$0 sm:$0xff] }
  0xb1   :  { %266 = vperm.xlu0 %709, %v258_v1   ;;  %472 = vmatpush.bf16.msra.mxu2 %v678_v27 }
  0xb3   :  { %390 = vmatpush.bf16.msra.mxu1 %v669_v11 }
  0xb5   :  { %473 = vmatpush.bf16.msra.mxu2 %v677_v29 }
  0xb7   :  { %391 = vmatpush.bf16.msra.mxu1 %v668_v12 }
  0xb9   :  { %474 = vmatpush.bf16.msra.mxu2 %v676_v31 }
  0xbb   :  { %392 = vmatpush.bf16.msra.mxu1 %v667_v13 }
  0xbd   :  { %475 = vmatpush.bf16.msra.mxu2 %v675_v33 }
  0xbf   :  { %393 = vmatpush.bf16.msra.mxu1 %v666_v16 }
  0xc1   :  { %476 = vmatpush.bf16.msra.mxu2 %v674_v37 }
  0xc3   :  { %394 = vmatpush.bf16.msra.mxu1 %v665_v18 }
  0xc5   :  { %477 = vmatpush.bf16.msra.mxu2 %v673_v45 }
  0xc7   :  { %395 = vmatpush.bf16.msra.mxu1 %v664_v23 }
  0xc9   :  { %478 = vmatpush.bf16.msra.mxu2 %v672_v46 }
 0x11b   :  { %v263_v14 = vpop.permute.xlu0 %262 }
 0x11c   :  { %vm264_vm1 = vcmp.ge.s32.totalorder %v260_v17, %v263_v14 }
 0x121   :  { %v302_v24 = vpop.permute.xlu1 %301 }
 0x122   :  { %713 = vrcp.f32 %v302_v24  ;;  %vm309_vm5 = vweird.f32 %v302_v24  ;;  %v315_v34 = vand.u32 2147483648, %v302_v24  ;;  %v313_v36 = vand.u32 2147483647, %v302_v24 }
 0x123   :  { %v267_v19 = vpop.permute.xlu0 %266 }
 0x124   :  { %vm268_vm2 = vcmp.lt.s32.totalorder %v260_v17, %v267_v19  ;;  %v316_v38 = vor.u32 1.1754944e-38, %v315_v34  ;;  %vm314_vm8 = vcmp.eq.f32.partialorder %v313_v36, 8.507059e+37 }
 0x125   :  { %vm269_vm3 = vmand %vm264_vm1, %vm268_vm2 }
 0x126   :  { %v590_v21 = vsel %vm269_vm3, 1.0, %v1052_v20 }
 0x127   :  { %v272_v22 = vpack.c.bf16 %v590_v21, %v590_v21 }
 0x128   :  { %v714_v26 = vpop.eup %713 }
 0x129   :  { %591 = vmatmul.msk.bf16.vlgmr.msra.gmra.mxu0 %vm278_vm4, %v272_v22  ;;  %v305_v28 = vmul.f32 %v714_v26, %v302_v24  ;;  %vm310_vm6 = vweird.f32 %v714_v26 }
 0x12a   :  { %vm311_vm7 = vmor %vm309_vm5, %vm310_vm6 }
 0x12b   :  { %v306_v30 = vsub.f32 1.0, %v305_v28 }
 0x12d   :  { %v307_v32 = vmul.f32 %v714_v26, %v306_v30 }
 0x12f   :  { %v308_v35 = vadd.f32 %v714_v26, %v307_v32 }
 0x131   :  { %v312_v39 = vsel %vm311_vm7, %v714_v26, %v308_v35 }
 0x132   :  { %v317_v41 = vsel %vm314_vm8, %v316_v38, %v312_v39 }
 0x1a6   :  { %v295_v40 = vpop.f32.mrf.mxu0 }
 0x1a7   :  { %v318_v42 = vmul.f32 %v317_v41, %v295_v40 }
 0x1a9   :  { %v319_v43 = vpack.c.bf16 %v318_v42, %v318_v42 }
 0x1ab   :  { %396 = vmatmul.bf16.vlgmr.msra.gmra.mxu1 %v319_v43 }
 0x1ae   :  { %v297_v44 = vpop.f32.mrf.mxu0 }
 0x228   :  { %v397_v48 = vpop.f32.mrf.mxu1 }
 0x229   :  { %v398_v49 = vadd.f32 %v711_v47, %v397_v48 }
 0x22b   :  { %v401_v50 = vmax.f32 %v398_v49, 0.0 }
 0x22d   :  { %v402_v51 = vpack.c.bf16 %v401_v50, %v401_v50 }
 0x22f   :  { %479 = vmatmul.bf16.vlgmr.msra.gmra.mxu2 %v402_v51 }
 0x230   :  { %v399_v52 = vpop.f32.mrf.mxu1 }
 0x2b2   :  { %v480_v54 = vpop.f32.mrf.mxu2 }
 0x2b3   :  { %v481_v55 = vadd.f32 %v712_v53, %v480_v54 }
 0x2b5   :  { %484 = vst [vmem:[#allocation11] sm:$0xff] %v481_v55 }
 0x2b6   :  { %495 = dma.vmem_to_hbm [thread:$0]  %s491_s26, 128, %s493_s13, [#allocation8]  }
 0x2ba   :  { %v482_v56 = vpop.f32.mrf.mxu2 }
 0x2bb   :  { %1031 = dma.done.wait [#allocation8], 128  }
 0x2bc   :  { %1032 = vsyncadd [#allocation8], 4294967168 }
 0x2bd   :  { %500 = vsyncpa [#allocation7], 1 }
 0x2be   :  { %501 = vsyncpa [#allocation10], 1 }
 0x2bf   :  { %502 = vsyncpa [#allocation8], 1 }
 0x2c0   :  { %503 = vsyncmov [#allocation3] }
 0x2c3   :  { %s504_s5 = vpop.sfrf %503 }
 0x2c4   :  { %p656_p0 = scmp.ne.s32.totalorder %s504_s5, 0 }
 0x2c6   :  { %508 = shalt.err (%p656_p0)  }
 0x2c7   :  { %510 = vsyncmov [#allocation3 + $0x1] }
 0x2ca   :  { %s511_s7 = vpop.sfrf %510 }
 0x2cb   :  { %p657_p5 = scmp.ne.s32.totalorder %s511_s7, 0 }
 0x2cd   :  { %515 = shalt.err (%p657_p5)  }
 0x2ce   :  { %517 = vsyncmov [#allocation3 + $0x2] }
 0x2d1   :  { %s518_s8 = vpop.sfrf %517 }
 0x2d2   :  { %p658_p6 = scmp.ne.s32.totalorder %s518_s8, 0 }
 0x2d4   :  { %522 = shalt.err (%p658_p6)  }
 0x2d5   :  { %524 = vsyncmov [#allocation3 + $0x3] }
 0x2d8   :  { %s525_s14 = vpop.sfrf %524 }
 0x2d9   :  { %p659_p7 = scmp.ne.s32.totalorder %s525_s14, 0 }
 0x2db   :  { %529 = shalt.err (%p659_p7)  }
 0x2dc   :  { %531 = vsyncmov [#allocation3 + $0x4] }
 0x2df   :  { %s532_s25 = vpop.sfrf %531 }
 0x2e0   :  { %p660_p8 = scmp.ne.s32.totalorder %s532_s25, 0 }
 0x2e2   :  { %536 = shalt.err (%p660_p8)  }
 0x2e3   :  { %538 = vsyncmov [#allocation3 + $0x5] }
 0x2e6   :  { %s539_s9 = vpop.sfrf %538 }
 0x2e7   :  { %p661_p9 = scmp.ne.s32.totalorder %s539_s9, 0 }
 0x2e9   :  { %543 = shalt.err (%p661_p9)  }
 0x2ea   :  { %545 = vsyncmov [#allocation3 + $0x6] }
 0x2ed   :  { %s546_s0 = vpop.sfrf %545 }
 0x2ee   :  { %p662_p10 = scmp.ne.s32.totalorder %s546_s0, 0 }
 0x2f0   :  { %550 = shalt.err (%p662_p10)  }
 0x2f1   :  { %552 = vsyncmov [#allocation3 + $0x7] }
 0x2f4   :  { %s553_s16 = vpop.sfrf %552 }
 0x2f5   :  { %p663_p11 = scmp.ne.s32.totalorder %s553_s16, 0 }
 0x2f7   :  { %557 = shalt.err (%p663_p11)  }

</bundles_post_ra>
